<compile_context>
chip_gen: v7x
topology: tpu7x:2x2x1
jax: 0.10.0
libtpu: 0.0.40
codegen_flags: <defaults>
</compile_context>

<pallas_src>
import jax
import jax.numpy as jnp
from jax.experimental import pallas as pl
from jax.experimental.pallas import tpu as pltpu

NUM_LAYER = 3
NUM_QUBITS = 6
NUM_ANGLES = NUM_LAYER * (2 * NUM_QUBITS - 1)      # 33
NUM_RXX = NUM_LAYER * (NUM_QUBITS - 1)             # 15
NUM_RZ = NUM_LAYER * NUM_QUBITS                    # 18
LANE = 128                                         # lane-dense output width
MAX_ROW_TILE = 1024                                # large tiles amortize grid overhead
SMALL_N_BYPASS = 512                               # below this, plain XLA is cheaper


def _round_up(x, m):
    return ((x + m - 1) // m) * m


# ---------------------------------------------------------------------------
# One-time parameter preparation (hoisted out of the per-step hot path).
# ---------------------------------------------------------------------------
def _angle_permutation():
    """Column order: [rxx angles of all layers, then rz angles of all layers]."""
    rxx_cols, rz_cols = [], []
    for layer in range(NUM_LAYER):
        base = layer * (2 * NUM_QUBITS - 1)
        rxx_cols.extend(range(base, base + NUM_QUBITS - 1))
        rz_cols.extend(range(base + NUM_QUBITS - 1, base + 2 * NUM_QUBITS - 1))
    return rxx_cols + rz_cols


def prepare_params(weight, bias, param_dtype=jnp.float32):
    """weight: (A, D) PyTorch-layout Linear weight; bias: (A,).

    Returns (w_pad, b_pad): pre-transposed (D, 128) weight and (1, 128) bias,
    with angle columns permuted rxx-first and zero-padded to lane width so the
    kernel output is lane-dense and exact after slicing.  Bias stays float32
    (it is added in the f32 accumulator); the weight may be bf16 if desired.
    """
    A, D = weight.shape
    assert A == NUM_ANGLES
    perm = jnp.asarray(_angle_permutation(), dtype=jnp.int32)
    w_t = weight.astype(jnp.float32)[perm].T            # (D, A), permuted cols
    b_p = bias.astype(jnp.float32)[perm]                # (A,)
    w_pad = jnp.zeros((D, LANE), jnp.float32).at[:, :A].set(w_t).astype(param_dtype)
    b_pad = jnp.zeros((1, LANE), jnp.float32).at[0, :A].set(b_p)
    return w_pad, b_pad


# ---------------------------------------------------------------------------
# Pallas kernel: one row-tile of   out = x @ W_pad + b_pad
# ---------------------------------------------------------------------------
def _linear_kernel(x_ref, wt_ref, b_ref, o_ref):
    # x_ref : (TM, D)   wt_ref : (D, 128)   b_ref : (1, 128)   o_ref : (TM, 128)
    acc = jnp.dot(x_ref[...], wt_ref[...], preferred_element_type=jnp.float32)
    o_ref[...] = (acc + b_ref[...]).astype(o_ref.dtype)


def qrnn_linear(x, w_pad, b_pad, *, out_dtype=jnp.float32, force_pallas=False):
    """angles_padded = x @ W + b for all rows of x (rows = flattened T*B).

    Weight/bias stay resident in VMEM across the whole grid; output is
    lane-dense (last dim = 128).  Returns the (N, 128) result; only columns
    [:NUM_ANGLES] are meaningful (the rest are exactly zero-weight columns).
    """
    N, D = x.shape
    A_pad = w_pad.shape[1]

    # Tiny-N bypass: custom-call launch + grid machinery costs several us,
    # far exceeding the matmul itself; let XLA fuse the tiny GEMM instead.
    if N < SMALL_N_BYPASS and not force_pallas:
        return (x.astype(jnp.float32) @ w_pad.astype(jnp.float32)
                + b_pad).astype(out_dtype)

    # Row-tile choice: as large as possible (amortizes ~0.35 us/step grid
    # overhead) while guaranteeing >= 2 grid blocks so the "parallel" axis
    # can shard across both TensorCores on v7x.  Always a multiple of 8.
    tm = min(MAX_ROW_TILE, max(8, _round_up(pl.cdiv(N, 2), 8)))
    n_pad = _round_up(N, tm)
    if n_pad != N:
        # Padded rows compute 0*W + b = bias; they are sliced off below and
        # must never be consumed downstream.
        x = jnp.pad(x, ((0, n_pad - N), (0, 0)))

    grid = (n_pad // tm,)
    out_isz = jnp.dtype(out_dtype).itemsize
    cost = pl.CostEstimate(
        flops=2 * n_pad * D * A_pad,
        transcendentals=0,
        bytes_accessed=(x.dtype.itemsize * n_pad * D
                        + w_pad.dtype.itemsize * D * A_pad
                        + 4 * A_pad
                        + out_isz * n_pad * A_pad),
    )

    out = pl.pallas_call(
        _linear_kernel,
        out_shape=jax.ShapeDtypeStruct((n_pad, A_pad), out_dtype),
        grid=grid,
        in_specs=[
            pl.BlockSpec((tm, D), lambda i: (i, 0)),      # row tile of x
            pl.BlockSpec((D, A_pad), lambda i: (0, 0)),   # weight resident (one DMA)
            pl.BlockSpec((1, A_pad), lambda i: (0, 0)),   # bias resident (one DMA)
        ],
        out_specs=pl.BlockSpec((tm, A_pad), lambda i: (i, 0)),
        compiler_params=pltpu.CompilerParams(
            dimension_semantics=("parallel",),            # both TCs on v7x
        ),
        cost_estimate=cost,
    )(x, w_pad, b_pad)

    return out[:N]


# ---------------------------------------------------------------------------
# Forward: mirrors QRNN.forward for a whole batch of rows (e.g. all T*B
# timestep rows processed in a single kernel launch).
# ---------------------------------------------------------------------------
def qrnn_forward(x, w_pad, b_pad, *, out_dtype=jnp.float32, force_pallas=False):
    """Returns (rxx_angles, rz_angles), each a length-NUM_LAYER tuple of the
    contiguous lane slices QRNN.forward feeds to the circuit:
         rxx_angles[l] : (N, NUM_QUBITS-1)  -> circuit.rxx_layer argument, layer l
         rz_angles[l]  : (N, NUM_QUBITS)    -> circuit.rz_layer  argument, layer l
    No transposes / relayouts are performed (slices are contiguous in lanes).
    """
    angles_pad = qrnn_linear(x, w_pad, b_pad, out_dtype=out_dtype,
                             force_pallas=force_pallas)   # (N, 128), permuted cols

    q1 = NUM_QUBITS - 1
    rxx = tuple(angles_pad[:, l * q1:(l + 1) * q1] for l in range(NUM_LAYER))
    rz = tuple(angles_pad[:, NUM_RXX + l * NUM_QUBITS:
                              NUM_RXX + (l + 1) * NUM_QUBITS]
               for l in range(NUM_LAYER))

    # TODO(synk): FFQuantumDevice.rxx_layer / rz_layer were not provided in the
    # source snippet, so the circuit-state update (and fusing its sin/cos into
    # the kernel's idle EUP slot) cannot be implemented; the exact per-layer
    # angle tensors that would be passed to it are returned instead.
    return rxx, rz


if __name__ == "__main__":
    SEQ = 8
    BATCH = 128
    INPUT_SIZE = 16
    N = SEQ * BATCH                                  # 1024 rows -> kernel path, 2 blocks

    key = jax.random.PRNGKey(0)
    kx, kw, kb = jax.random.split(key, 3)

    # Deterministic PyTorch-Linear-style init (uniform bound 1/sqrt(fan_in)).
    bound = 1.0 / (INPUT_SIZE ** 0.5)
    weight = jax.random.uniform(kw, (NUM_ANGLES, INPUT_SIZE),
                                minval=-bound, maxval=bound, dtype=jnp.float32)
    bias = jax.random.uniform(kb, (NUM_ANGLES,),
                              minval=-bound, maxval=bound, dtype=jnp.float32)
    x_seq = jax.random.normal(kx, (SEQ, BATCH, INPUT_SIZE), dtype=jnp.float32)
    x = x_seq.reshape(N, INPUT_SIZE)

    # One-time parameter prep (transpose / permute / pad / cast hoisted here).
    w_pad, b_pad = prepare_params(weight, bias)

    fwd = jax.jit(qrnn_forward)
    rxx_angles, rz_angles = fwd(x, w_pad, b_pad)
    jax.block_until_ready((rxx_angles, rz_angles))

    # Correctness check against plain-JAX reference of the Linear layer with
    # the original (un-permuted) column semantics of QRNN.forward.
    ref = x @ weight.T + bias                        # (N, 33)
    ok = True
    ang = 0
    for layer in range(NUM_LAYER):
        ok &= rxx_angles[layer].shape == (N, NUM_QUBITS - 1)
        ok &= bool(jnp.allclose(rxx_angles[layer],
                                ref[:, ang:ang + NUM_QUBITS - 1],
                                atol=1e-5, rtol=1e-5))
        ang += NUM_QUBITS - 1
        ok &= rz_angles[layer].shape == (N, NUM_QUBITS)
        ok &= bool(jnp.allclose(rz_angles[layer],
                                ref[:, ang:ang + NUM_QUBITS],
                                atol=1e-5, rtol=1e-5))
        ang += NUM_QUBITS
    assert ok

    # Also exercise the small-N bypass path (plain-XLA fallback) for exactness.
    x_small = x[:64]
    rxx_s, rz_s = qrnn_forward(x_small, w_pad, b_pad)
    jax.block_until_ready((rxx_s, rz_s))
    ref_s = x_small @ weight.T + bias
    assert bool(jnp.allclose(rxx_s[0], ref_s[:, :NUM_QUBITS - 1],
                             atol=1e-5, rtol=1e-5))
    assert bool(jnp.allclose(rz_s[0], ref_s[:, NUM_QUBITS - 1:2 * NUM_QUBITS - 1],
                             atol=1e-5, rtol=1e-5))

    print("KERNEL_OK")
</pallas_src>

<mosaic_0001>
module attributes {stable_mosaic.version = 11 : i64} {
  func.func @_linear_kernel(%arg0: i32, %arg1: memref<512x16xf32, #tpu.memory_space<vmem>>, %arg2: memref<16x128xf32, #tpu.memory_space<vmem>>, %arg3: memref<1x128xf32, #tpu.memory_space<vmem>>, %arg4: memref<512x128xf32, #tpu.memory_space<vmem>>) attributes {dimension_semantics = [#tpu.dimension_semantics<parallel>], iteration_bounds = array<i64: 2>, scalar_prefetch = 0 : i64, scratch_operands = 0 : i64, tpu.core_type = #tpu.core_type<tc>, window_params = [{transform_indices = @transform_0, window_bounds = array<i64: 512, 16>}, {pipeline_mode = #tpu.pipeline_mode<synchronous>, transform_indices = @transform_1, window_bounds = array<i64: 16, 128>}, {pipeline_mode = #tpu.pipeline_mode<synchronous>, transform_indices = @transform_2, window_bounds = array<i64: 1, 128>}, {transform_indices = @transform_3, window_bounds = array<i64: 512, 128>}]} {
    %c0 = arith.constant 0 : index
    %c0_0 = arith.constant 0 : index
    %0 = vector.load %arg1[%c0, %c0_0] : memref<512x16xf32, #tpu.memory_space<vmem>>, vector<512x16xf32>
    %c0_1 = arith.constant 0 : index
    %c0_2 = arith.constant 0 : index
    %1 = vector.load %arg2[%c0_1, %c0_2] : memref<16x128xf32, #tpu.memory_space<vmem>>, vector<16x128xf32>
    %cst = arith.constant dense<0.000000e+00> : vector<512x128xf32>
    %2 = tpu.matmul %0, %1, %cst {dimension_numbers = #tpu.dot_dimension_numbers<[1], [0], [0], [1], [0, 0, 1, 1], [], []>} : vector<512x16xf32>, vector<16x128xf32>, vector<512x128xf32> -> vector<512x128xf32>
    %c0_3 = arith.constant 0 : index
    %c0_4 = arith.constant 0 : index
    %3 = vector.load %arg3[%c0_3, %c0_4] : memref<1x128xf32, #tpu.memory_space<vmem>>, vector<1x128xf32>
    %4 = vector.broadcast %3 : vector<1x128xf32> to vector<512x128xf32>
    %5 = arith.addf %2, %4 : vector<512x128xf32>
    %c0_5 = arith.constant 0 : index
    %c0_6 = arith.constant 0 : index
    %6 = vector.load %arg4[%c0_5, %c0_6] : memref<512x128xf32, #tpu.memory_space<vmem>>, vector<512x128xf32>
    tpu.vector_store %arg4[%c0_5, %c0_6], %5 {strides = array<i32>} : memref<512x128xf32, #tpu.memory_space<vmem>>, vector<512x128xf32>,
    return
  }
  func.func @transform_0(%arg0: i32) -> (i32, i32) {
    %c0_i32 = arith.constant 0 : i32
    %c0_i32_0 = arith.constant 0 : i32
    return %arg0, %c0_i32 : i32, i32
  }
  func.func @transform_1(%arg0: i32) -> (i32, i32) {
    %c0_i32 = arith.constant 0 : i32
    %c0_i32_0 = arith.constant 0 : i32
    %c0_i32_1 = arith.constant 0 : i32
    return %c0_i32, %c0_i32_0 : i32, i32
  }
  func.func @transform_2(%arg0: i32) -> (i32, i32) {
    %c0_i32 = arith.constant 0 : i32
    %c0_i32_0 = arith.constant 0 : i32
    %c0_i32_1 = arith.constant 0 : i32
    return %c0_i32, %c0_i32_0 : i32, i32
  }
  func.func @transform_3(%arg0: i32) -> (i32, i32) {
    %c0_i32 = arith.constant 0 : i32
    %c0_i32_0 = arith.constant 0 : i32
    return %arg0, %c0_i32 : i32, i32
  }
}

</mosaic_0001>

<bundles_post_ra>
// kernel: qrnn_forward.1
= control target key start
LH: loop header
LB: loop body
LE: loop exit
PB: predicated region body
PF: predicated region fallthrough
CT: control target
= control target key end

     0   :  { %s1229_s12 = smov 0   ;;  %s1524_s0 = inlined_call_operand.vmem [shape: f32[1024,16], index: 0, kind: input, shape index: {}]   ;;  %s1525_s1 = inlined_call_operand.vmem [shape: f32[16,128], index: 1, kind: input, shape index: {}]   ;;  %s1526_s2 = inlined_call_operand.vmem [shape: f32[1,128], index: 2, kind: input, shape index: {}]   ;;  %s1527_s3 = inlined_call_operand.vmem [shape: f32[1024,128], index: 3, kind: output, shape index: {}]  }
   0x1 LB: > { %s945_s13 = sadd.s32 4294967295, %s1207_s12   ;;  %p949_p0 = scmp.ge.s32.totalorder %s1207_s12, 1  ;;  %s1207_s12 = sphi %s1229_s12, %s13_s12  }
   0x2   : > { %p138_p1 = scmp.lt.s32.totalorder %s1207_s12, 3 }
   0x4   : > { %p139_p2 = pnand %p949_p0, %p138_p1 }
   0x5   : > { %v238_v0 = vld [vmem:[%s1525_s1] sm:$0xff] (!%p139_p2)  ;;  %v239_v1 = vld [vmem:[%s1525_s1 + $0x8] sm:$0xff] (!%p139_p2)  ;;  %s950_s18 = sshll.u32 (!%p139_p2), %s945_s13, 6  ;;  %vm247_vm0 = vcmask (!%p139_p2), 130048  }
   0x6   : > { %142 = sbr.rel (%p139_p2) target bundleno = 295 (0x127), region = 32  ;;  %v1187_v2 = vpack.c.bf16 (!%p139_p2), %v239_v1, %v238_v0  ;;  %p163_p3 = scmp.lt.s32.totalorder (!%p139_p2), %s950_s18, 127 }
   0x8   : > { %1188 = vmatprep.subr.bf16.mxu0 (!%p139_p2), %v1187_v2  ;;  %1191 = vmatprep.subr.bf16.mxu1 (!%p139_p2), %v1187_v2 }
   0x9   : > { %1190 = vmatpush3.bf16.msra.mxu0 (!%p139_p2), %v1187_v2  ;;  %1192 = vmatpush3.bf16.msra.mxu1 (!%p139_p2), %v1187_v2 }
   0xd   : > { %s1529_s18 = smov (!%p163_p3, %s950_s18), 127 }
   0xe   : > { %s951_s19 = sshll.u32 %s1529_s18, 3 }
   0xf   : > { %s1251_s22 = scalar_lea.vmem %s1524_s0, %s951_s19  ;;  %s1391_s27 = scalar_lea.vmem %s1527_s3, %s951_s19 }
  0x10   : > { %v174_v3 = vld [vmem:[%s1251_s22] sm:$0xff]  ;;  %v175_v5 = vld [vmem:[%s1251_s22 + $0x8] sm:$0xff]  ;;  %v176_v7 = vld [vmem:[%s1251_s22 + $0x10] sm:$0xff] }
  0x11   : > { %v206_v4 = vld [vmem:[%s1251_s22 + $0x100] sm:$0xff]  ;;  %1091 = vmatprep.mubr.msk.f32.mxu0 %vm247_vm0, %v174_v3  ;;  %v207_v6 = vld [vmem:[%s1251_s22 + $0x108] sm:$0xff]  ;;  %v208_v8 = vld [vmem:[%s1251_s22 + $0x110] sm:$0xff] }
  0x12   : > { %1139 = vmatprep.mubr.msk.f32.mxu1 %vm247_vm0, %v206_v4  ;;  %1092 = vmatmul.mubr.msk.f32.vlgmr.msra.gmra.mrb[0].mxu0 %vm247_vm0, %v175_v5  ;;  %v177_v9 = vld [vmem:[%s1251_s22 + $0x18] sm:$0xff]  ;;  %v178_v11 = vld [vmem:[%s1251_s22 + $0x20] sm:$0xff]  ;;  %v179_v13 = vld [vmem:[%s1251_s22 + $0x28] sm:$0xff] }
  0x13   : > { %1140 = vmatmul.mubr.msk.f32.vlgmr.msra.gmra.mrb[0].mxu1 %vm247_vm0, %v207_v6  ;;  %1094 = vmatprep.mubr.msk.f32.mxu0 %vm247_vm0, %v176_v7  ;;  %v209_v10 = vld [vmem:[%s1251_s22 + $0x118] sm:$0xff]  ;;  %v210_v12 = vld [vmem:[%s1251_s22 + $0x120] sm:$0xff]  ;;  %v211_v14 = vld [vmem:[%s1251_s22 + $0x128] sm:$0xff] }
  0x14   : > { %1142 = vmatprep.mubr.msk.f32.mxu1 %vm247_vm0, %v208_v8  ;;  %v180_v15 = vld [vmem:[%s1251_s22 + $0x30] sm:$0xff]  ;;  %v181_v17 = vld [vmem:[%s1251_s22 + $0x38] sm:$0xff]  ;;  %v182_v19 = vld [vmem:[%s1251_s22 + $0x40] sm:$0xff] }
  0x15   : > { %v212_v16 = vld [vmem:[%s1251_s22 + $0x130] sm:$0xff]  ;;  %v213_v18 = vld [vmem:[%s1251_s22 + $0x138] sm:$0xff]  ;;  %v214_v20 = vld [vmem:[%s1251_s22 + $0x140] sm:$0xff] }
  0x16   : > { %1095 = vmatmul.mubr.msk.f32.gmra.mrb[2].mxu0 %vm247_vm0, %v177_v9  ;;  %v183_v21 = vld [vmem:[%s1251_s22 + $0x48] sm:$0xff]  ;;  %v184_v23 = vld [vmem:[%s1251_s22 + $0x50] sm:$0xff]  ;;  %v185_v25 = vld [vmem:[%s1251_s22 + $0x58] sm:$0xff] }
  0x17   : > { %1143 = vmatmul.mubr.msk.f32.gmra.mrb[2].mxu1 %vm247_vm0, %v209_v10  ;;  %1097 = vmatprep.mubr.msk.f32.mxu0 %vm247_vm0, %v178_v11  ;;  %v215_v22 = vld [vmem:[%s1251_s22 + $0x148] sm:$0xff]  ;;  %v216_v24 = vld [vmem:[%s1251_s22 + $0x150] sm:$0xff]  ;;  %v217_v26 = vld [vmem:[%s1251_s22 + $0x158] sm:$0xff] }
  0x18   : > { %1145 = vmatprep.mubr.msk.f32.mxu1 %vm247_vm0, %v210_v12  ;;  %v186_v27 = vld [vmem:[%s1251_s22 + $0x60] sm:$0xff]  ;;  %v187_v29 = vld [vmem:[%s1251_s22 + $0x68] sm:$0xff]  ;;  %v188_v31 = vld [vmem:[%s1251_s22 + $0x70] sm:$0xff] }
  0x19   : > { %v218_v28 = vld [vmem:[%s1251_s22 + $0x160] sm:$0xff]  ;;  %v219_v30 = vld [vmem:[%s1251_s22 + $0x168] sm:$0xff]  ;;  %v220_v32 = vld [vmem:[%s1251_s22 + $0x170] sm:$0xff] }
  0x1a   : > { %1098 = vmatmul.mubr.msk.f32.gmra.mrb[4].mxu0 %vm247_vm0, %v179_v13  ;;  %v189_v33 = vld [vmem:[%s1251_s22 + $0x78] sm:$0xff]  ;;  %v190_v35 = vld [vmem:[%s1251_s22 + $0x80] sm:$0xff]  ;;  %v191_v37 = vld [vmem:[%s1251_s22 + $0x88] sm:$0xff] }
  0x1b   : > { %1146 = vmatmul.mubr.msk.f32.gmra.mrb[4].mxu1 %vm247_vm0, %v211_v14  ;;  %1100 = vmatprep.mubr.msk.f32.mxu0 %vm247_vm0, %v180_v15  ;;  %v221_v34 = vld [vmem:[%s1251_s22 + $0x178] sm:$0xff]  ;;  %v222_v36 = vld [vmem:[%s1251_s22 + $0x180] sm:$0xff]  ;;  %v223_v38 = vld [vmem:[%s1251_s22 + $0x188] sm:$0xff] }
  0x1c   : > { %1148 = vmatprep.mubr.msk.f32.mxu1 %vm247_vm0, %v212_v16  ;;  %v192_v39 = vld [vmem:[%s1251_s22 + $0x90] sm:$0xff]  ;;  %v193_v41 = vld [vmem:[%s1251_s22 + $0x98] sm:$0xff]  ;;  %v194_v43 = vld [vmem:[%s1251_s22 + $0xa0] sm:$0xff] }
  0x1d   : > { %v224_v40 = vld [vmem:[%s1251_s22 + $0x190] sm:$0xff]  ;;  %v225_v42 = vld [vmem:[%s1251_s22 + $0x198] sm:$0xff]  ;;  %v226_v44 = vld [vmem:[%s1251_s22 + $0x1a0] sm:$0xff] }
  0x1e   : > { %1101 = vmatmul.mubr.msk.f32.gmra.mrb[6].mxu0 %vm247_vm0, %v181_v17  ;;  %v195_v45 = vld [vmem:[%s1251_s22 + $0xa8] sm:$0xff]  ;;  %v196_v47 = vld [vmem:[%s1251_s22 + $0xb0] sm:$0xff]  ;;  %v197_v49 = vld [vmem:[%s1251_s22 + $0xb8] sm:$0xff] }
  0x1f   : > { %1149 = vmatmul.mubr.msk.f32.gmra.mrb[6].mxu1 %vm247_vm0, %v213_v18  ;;  %1103 = vmatprep.mubr.msk.f32.mxu0 %vm247_vm0, %v182_v19  ;;  %v227_v46 = vld [vmem:[%s1251_s22 + $0x1a8] sm:$0xff]  ;;  %v228_v48 = vld [vmem:[%s1251_s22 + $0x1b0] sm:$0xff]  ;;  %v229_v50 = vld [vmem:[%s1251_s22 + $0x1b8] sm:$0xff] }
  0x20   : > { %1151 = vmatprep.mubr.msk.f32.mxu1 %vm247_vm0, %v214_v20  ;;  %v198_v51 = vld [vmem:[%s1251_s22 + $0xc0] sm:$0xff]  ;;  %v199_v53 = vld [vmem:[%s1251_s22 + $0xc8] sm:$0xff]  ;;  %v200_v55 = vld [vmem:[%s1251_s22 + $0xd0] sm:$0xff] }
  0x21   : > { %v230_v52 = vld [vmem:[%s1251_s22 + $0x1c0] sm:$0xff]  ;;  %v231_v54 = vld [vmem:[%s1251_s22 + $0x1c8] sm:$0xff]  ;;  %v232_v56 = vld [vmem:[%s1251_s22 + $0x1d0] sm:$0xff] }
  0x22   : > { %1104 = vmatmul.mubr.msk.f32.gmra.mrb[8].mxu0 %vm247_vm0, %v183_v21  ;;  %v201_v57 = vld [vmem:[%s1251_s22 + $0xd8] sm:$0xff]  ;;  %v202_v59 = vld [vmem:[%s1251_s22 + $0xe0] sm:$0xff]  ;;  %v203_v61 = vld [vmem:[%s1251_s22 + $0xe8] sm:$0xff] }
  0x23   : > { %1152 = vmatmul.mubr.msk.f32.gmra.mrb[8].mxu1 %vm247_vm0, %v215_v22  ;;  %1106 = vmatprep.mubr.msk.f32.mxu0 %vm247_vm0, %v184_v23  ;;  %v233_v58 = vld [vmem:[%s1251_s22 + $0x1d8] sm:$0xff]  ;;  %v234_v60 = vld [vmem:[%s1251_s22 + $0x1e0] sm:$0xff]  ;;  %v235_v62 = vld [vmem:[%s1251_s22 + $0x1e8] sm:$0xff] }
  0x24   : > { %1154 = vmatprep.mubr.msk.f32.mxu1 %vm247_vm0, %v216_v24  ;;  %v204_v63 = vld [vmem:[%s1251_s22 + $0xf0] sm:$0xff]  ;;  %v205_v1 = vld [vmem:[%s1251_s22 + $0xf8] sm:$0xff]  ;;  %v1384_v3 = vld [vmem:[%s1526_s2] ss:$0 sm:$0xff] }
  0x25   : > { %v236_v0 = vld [vmem:[%s1251_s22 + $0x1f0] sm:$0xff]  ;;  %v237_v2 = vld [vmem:[%s1251_s22 + $0x1f8] sm:$0xff] }
  0x26   : > { %1107 = vmatmul.mubr.msk.f32.gmra.mrb[10].mxu0 %vm247_vm0, %v185_v25 }
  0x27   : > { %1155 = vmatmul.mubr.msk.f32.gmra.mrb[10].mxu1 %vm247_vm0, %v217_v26  ;;  %1109 = vmatprep.mubr.msk.f32.mxu0 %vm247_vm0, %v186_v27 }
  0x28   : > { %1157 = vmatprep.mubr.msk.f32.mxu1 %vm247_vm0, %v218_v28 }
  0x2a   : > { %1110 = vmatmul.mubr.msk.f32.gmra.mrb[12].mxu0 %vm247_vm0, %v187_v29 }
  0x2b   : > { %1158 = vmatmul.mubr.msk.f32.gmra.mrb[12].mxu1 %vm247_vm0, %v219_v30  ;;  %1112 = vmatprep.mubr.msk.f32.mxu0 %vm247_vm0, %v188_v31 }
  0x2c   : > { %1160 = vmatprep.mubr.msk.f32.mxu1 %vm247_vm0, %v220_v32 }
  0x2e   : > { %1113 = vmatmul.mubr.msk.f32.gmra.mrb[14].mxu0 %vm247_vm0, %v189_v33 }
  0x2f   : > { %1161 = vmatmul.mubr.msk.f32.gmra.mrb[14].mxu1 %vm247_vm0, %v221_v34  ;;  %1115 = vmatprep.mubr.msk.f32.mxu0 %vm247_vm0, %v190_v35 }
  0x30   : > { %1163 = vmatprep.mubr.msk.f32.mxu1 %vm247_vm0, %v222_v36 }
  0x32   : > { %1116 = vmatmul.mubr.msk.f32.gmra.mrb[16].mxu0 %vm247_vm0, %v191_v37 }
  0x33   : > { %1164 = vmatmul.mubr.msk.f32.gmra.mrb[16].mxu1 %vm247_vm0, %v223_v38  ;;  %1118 = vmatprep.mubr.msk.f32.mxu0 %vm247_vm0, %v192_v39 }
  0x34   : > { %1166 = vmatprep.mubr.msk.f32.mxu1 %vm247_vm0, %v224_v40 }
  0x36   : > { %1119 = vmatmul.mubr.msk.f32.gmra.mrb[18].mxu0 %vm247_vm0, %v193_v41 }
  0x37   : > { %1167 = vmatmul.mubr.msk.f32.gmra.mrb[18].mxu1 %vm247_vm0, %v225_v42  ;;  %1121 = vmatprep.mubr.msk.f32.mxu0 %vm247_vm0, %v194_v43 }
  0x38   : > { %1169 = vmatprep.mubr.msk.f32.mxu1 %vm247_vm0, %v226_v44 }
  0x3a   : > { %1122 = vmatmul.mubr.msk.f32.gmra.mrb[20].mxu0 %vm247_vm0, %v195_v45 }
  0x3b   : > { %1170 = vmatmul.mubr.msk.f32.gmra.mrb[20].mxu1 %vm247_vm0, %v227_v46  ;;  %1124 = vmatprep.mubr.msk.f32.mxu0 %vm247_vm0, %v196_v47 }
  0x3c   : > { %1172 = vmatprep.mubr.msk.f32.mxu1 %vm247_vm0, %v228_v48 }
  0x3e   : > { %1125 = vmatmul.mubr.msk.f32.gmra.mrb[22].mxu0 %vm247_vm0, %v197_v49 }
  0x3f   : > { %1173 = vmatmul.mubr.msk.f32.gmra.mrb[22].mxu1 %vm247_vm0, %v229_v50  ;;  %1127 = vmatprep.mubr.msk.f32.mxu0 %vm247_vm0, %v198_v51 }
  0x40   : > { %1175 = vmatprep.mubr.msk.f32.mxu1 %vm247_vm0, %v230_v52 }
  0x42   : > { %1128 = vmatmul.mubr.msk.f32.gmra.mrb[24].mxu0 %vm247_vm0, %v199_v53 }
  0x43   : > { %1176 = vmatmul.mubr.msk.f32.gmra.mrb[24].mxu1 %vm247_vm0, %v231_v54  ;;  %1130 = vmatprep.mubr.msk.f32.mxu0 %vm247_vm0, %v200_v55 }
  0x44   : > { %1178 = vmatprep.mubr.msk.f32.mxu1 %vm247_vm0, %v232_v56 }
  0x46   : > { %1131 = vmatmul.mubr.msk.f32.gmra.mrb[26].mxu0 %vm247_vm0, %v201_v57 }
  0x47   : > { %1179 = vmatmul.mubr.msk.f32.gmra.mrb[26].mxu1 %vm247_vm0, %v233_v58  ;;  %1133 = vmatprep.mubr.msk.f32.mxu0 %vm247_vm0, %v202_v59 }
  0x48   : > { %1181 = vmatprep.mubr.msk.f32.mxu1 %vm247_vm0, %v234_v60 }
  0x4a   : > { %1134 = vmatmul.mubr.msk.f32.gmra.mrb[28].mxu0 %vm247_vm0, %v203_v61 }
  0x4b   : > { %1182 = vmatmul.mubr.msk.f32.gmra.mrb[28].mxu1 %vm247_vm0, %v235_v62  ;;  %1136 = vmatprep.mubr.msk.f32.mxu0 %vm247_vm0, %v204_v63 }
  0x4c   : > { %1184 = vmatprep.mubr.msk.f32.mxu1 %vm247_vm0, %v236_v0 }
  0x4e   : > { %1137 = vmatmul.mubr.msk.f32.gmra.mrb[30].mxu0 %vm247_vm0, %v205_v1 }
  0x4f   : > { %1185 = vmatmul.mubr.msk.f32.gmra.mrb[30].mxu1 %vm247_vm0, %v237_v2 }
  0xe5   : > { %v1093_v4 = vpop.f32.mrb[0].mxu0 }
  0xe6   : > { %v1141_v5 = vpop.f32.mrb[0].mxu1  ;;  %v512_v6 = vadd.f32 %v1093_v4, %v1384_v3  ;;  %v506_v8 = vpop.f32.mrb[1].mxu0 }
  0xe7   : > { %v672_v7 = vadd.f32 %v1141_v5, %v1384_v3  ;;  %v666_v9 = vpop.f32.mrb[1].mxu1  ;;  %v507_v10 = vadd.f32 %v1384_v3, %v506_v8 }
  0xe8   : > { %v667_v11 = vadd.f32 %v1384_v3, %v666_v9  ;;  %826 = vst [vmem:[%s1391_s27 + $0x8] sm:$0xff] %v512_v6 }
  0xe9   : > { %858 = vst [vmem:[%s1391_s27 + $0x108] sm:$0xff] %v672_v7  ;;  %825 = vst [vmem:[%s1391_s27] sm:$0xff] %v507_v10  ;;  %v1096_v12 = vpop.f32.mrb[2].mxu0 }
  0xea   : > { %857 = vst [vmem:[%s1391_s27 + $0x100] sm:$0xff] %v667_v11  ;;  %v1144_v13 = vpop.f32.mrb[2].mxu1  ;;  %v522_v14 = vadd.f32 %v1096_v12, %v1384_v3  ;;  %v516_v16 = vpop.f32.mrb[3].mxu0 }
  0xeb   : > { %v682_v15 = vadd.f32 %v1144_v13, %v1384_v3  ;;  %v676_v17 = vpop.f32.mrb[3].mxu1  ;;  %v517_v18 = vadd.f32 %v1384_v3, %v516_v16 }
  0xec   : > { %v677_v19 = vadd.f32 %v1384_v3, %v676_v17  ;;  %828 = vst [vmem:[%s1391_s27 + $0x18] sm:$0xff] %v522_v14 }
  0xed   : > { %860 = vst [vmem:[%s1391_s27 + $0x118] sm:$0xff] %v682_v15  ;;  %827 = vst [vmem:[%s1391_s27 + $0x10] sm:$0xff] %v517_v18  ;;  %v1099_v20 = vpop.f32.mrb[4].mxu0 }
  0xee   : > { %859 = vst [vmem:[%s1391_s27 + $0x110] sm:$0xff] %v677_v19  ;;  %v1147_v21 = vpop.f32.mrb[4].mxu1  ;;  %v532_v22 = vadd.f32 %v1099_v20, %v1384_v3  ;;  %v526_v24 = vpop.f32.mrb[5].mxu0 }
  0xef   : > { %v692_v23 = vadd.f32 %v1147_v21, %v1384_v3  ;;  %v686_v25 = vpop.f32.mrb[5].mxu1  ;;  %v527_v26 = vadd.f32 %v1384_v3, %v526_v24 }
  0xf0   : > { %v687_v27 = vadd.f32 %v1384_v3, %v686_v25  ;;  %830 = vst [vmem:[%s1391_s27 + $0x28] sm:$0xff] %v532_v22 }
  0xf1   : > { %862 = vst [vmem:[%s1391_s27 + $0x128] sm:$0xff] %v692_v23  ;;  %829 = vst [vmem:[%s1391_s27 + $0x20] sm:$0xff] %v527_v26  ;;  %v1102_v28 = vpop.f32.mrb[6].mxu0 }
  0xf2   : > { %861 = vst [vmem:[%s1391_s27 + $0x120] sm:$0xff] %v687_v27  ;;  %v1150_v29 = vpop.f32.mrb[6].mxu1  ;;  %v542_v30 = vadd.f32 %v1102_v28, %v1384_v3  ;;  %v536_v32 = vpop.f32.mrb[7].mxu0 }
  0xf3   : > { %v702_v31 = vadd.f32 %v1150_v29, %v1384_v3  ;;  %v696_v33 = vpop.f32.mrb[7].mxu1  ;;  %v537_v34 = vadd.f32 %v1384_v3, %v536_v32 }
  0xf4   : > { %v697_v35 = vadd.f32 %v1384_v3, %v696_v33  ;;  %832 = vst [vmem:[%s1391_s27 + $0x38] sm:$0xff] %v542_v30 }
  0xf5   : > { %864 = vst [vmem:[%s1391_s27 + $0x138] sm:$0xff] %v702_v31  ;;  %831 = vst [vmem:[%s1391_s27 + $0x30] sm:$0xff] %v537_v34  ;;  %v1105_v36 = vpop.f32.mrb[8].mxu0 }
  0xf6   : > { %863 = vst [vmem:[%s1391_s27 + $0x130] sm:$0xff] %v697_v35  ;;  %v1153_v37 = vpop.f32.mrb[8].mxu1  ;;  %v552_v38 = vadd.f32 %v1105_v36, %v1384_v3  ;;  %v546_v40 = vpop.f32.mrb[9].mxu0 }
  0xf7   : > { %v712_v39 = vadd.f32 %v1153_v37, %v1384_v3  ;;  %v706_v41 = vpop.f32.mrb[9].mxu1  ;;  %v547_v42 = vadd.f32 %v1384_v3, %v546_v40 }
  0xf8   : > { %v707_v43 = vadd.f32 %v1384_v3, %v706_v41  ;;  %834 = vst [vmem:[%s1391_s27 + $0x48] sm:$0xff] %v552_v38 }
  0xf9   : > { %866 = vst [vmem:[%s1391_s27 + $0x148] sm:$0xff] %v712_v39  ;;  %833 = vst [vmem:[%s1391_s27 + $0x40] sm:$0xff] %v547_v42  ;;  %v1108_v44 = vpop.f32.mrb[10].mxu0 }
  0xfa   : > { %865 = vst [vmem:[%s1391_s27 + $0x140] sm:$0xff] %v707_v43  ;;  %v1156_v45 = vpop.f32.mrb[10].mxu1  ;;  %v562_v46 = vadd.f32 %v1108_v44, %v1384_v3  ;;  %v556_v48 = vpop.f32.mrb[11].mxu0 }
  0xfb   : > { %v722_v47 = vadd.f32 %v1156_v45, %v1384_v3  ;;  %v716_v49 = vpop.f32.mrb[11].mxu1  ;;  %v557_v50 = vadd.f32 %v1384_v3, %v556_v48 }
  0xfc   : > { %v717_v51 = vadd.f32 %v1384_v3, %v716_v49  ;;  %836 = vst [vmem:[%s1391_s27 + $0x58] sm:$0xff] %v562_v46 }
  0xfd   : > { %868 = vst [vmem:[%s1391_s27 + $0x158] sm:$0xff] %v722_v47  ;;  %835 = vst [vmem:[%s1391_s27 + $0x50] sm:$0xff] %v557_v50  ;;  %v1111_v52 = vpop.f32.mrb[12].mxu0 }
  0xfe   : > { %867 = vst [vmem:[%s1391_s27 + $0x150] sm:$0xff] %v717_v51  ;;  %v1159_v53 = vpop.f32.mrb[12].mxu1  ;;  %v572_v54 = vadd.f32 %v1111_v52, %v1384_v3  ;;  %v566_v56 = vpop.f32.mrb[13].mxu0 }
  0xff   : > { %v732_v55 = vadd.f32 %v1159_v53, %v1384_v3  ;;  %v726_v57 = vpop.f32.mrb[13].mxu1  ;;  %v567_v58 = vadd.f32 %v1384_v3, %v566_v56 }
 0x100   : > { %v727_v59 = vadd.f32 %v1384_v3, %v726_v57  ;;  %838 = vst [vmem:[%s1391_s27 + $0x68] sm:$0xff] %v572_v54 }
 0x101   : > { %870 = vst [vmem:[%s1391_s27 + $0x168] sm:$0xff] %v732_v55  ;;  %837 = vst [vmem:[%s1391_s27 + $0x60] sm:$0xff] %v567_v58  ;;  %v1114_v60 = vpop.f32.mrb[14].mxu0 }
 0x102   : > { %869 = vst [vmem:[%s1391_s27 + $0x160] sm:$0xff] %v727_v59  ;;  %v1162_v61 = vpop.f32.mrb[14].mxu1  ;;  %v582_v62 = vadd.f32 %v1114_v60, %v1384_v3  ;;  %v576_v0 = vpop.f32.mrb[15].mxu0 }
 0x103   : > { %v742_v63 = vadd.f32 %v1162_v61, %v1384_v3  ;;  %v736_v1 = vpop.f32.mrb[15].mxu1  ;;  %v577_v2 = vadd.f32 %v1384_v3, %v576_v0 }
 0x104   : > { %v737_v4 = vadd.f32 %v1384_v3, %v736_v1  ;;  %840 = vst [vmem:[%s1391_s27 + $0x78] sm:$0xff] %v582_v62 }
 0x105   : > { %872 = vst [vmem:[%s1391_s27 + $0x178] sm:$0xff] %v742_v63  ;;  %839 = vst [vmem:[%s1391_s27 + $0x70] sm:$0xff] %v577_v2  ;;  %v1117_v5 = vpop.f32.mrb[16].mxu0 }
 0x106   : > { %871 = vst [vmem:[%s1391_s27 + $0x170] sm:$0xff] %v737_v4  ;;  %v1165_v6 = vpop.f32.mrb[16].mxu1  ;;  %v592_v7 = vadd.f32 %v1117_v5, %v1384_v3  ;;  %v586_v9 = vpop.f32.mrb[17].mxu0 }
 0x107   : > { %v752_v8 = vadd.f32 %v1165_v6, %v1384_v3  ;;  %v746_v10 = vpop.f32.mrb[17].mxu1  ;;  %v587_v11 = vadd.f32 %v1384_v3, %v586_v9 }
 0x108   : > { %v747_v12 = vadd.f32 %v1384_v3, %v746_v10  ;;  %842 = vst [vmem:[%s1391_s27 + $0x88] sm:$0xff] %v592_v7 }
 0x109   : > { %874 = vst [vmem:[%s1391_s27 + $0x188] sm:$0xff] %v752_v8  ;;  %841 = vst [vmem:[%s1391_s27 + $0x80] sm:$0xff] %v587_v11  ;;  %v1120_v13 = vpop.f32.mrb[18].mxu0 }
 0x10a   : > { %873 = vst [vmem:[%s1391_s27 + $0x180] sm:$0xff] %v747_v12  ;;  %v1168_v14 = vpop.f32.mrb[18].mxu1  ;;  %v602_v15 = vadd.f32 %v1120_v13, %v1384_v3  ;;  %v596_v17 = vpop.f32.mrb[19].mxu0 }
 0x10b   : > { %v762_v16 = vadd.f32 %v1168_v14, %v1384_v3  ;;  %v756_v18 = vpop.f32.mrb[19].mxu1  ;;  %v597_v19 = vadd.f32 %v1384_v3, %v596_v17 }
 0x10c   : > { %v757_v20 = vadd.f32 %v1384_v3, %v756_v18  ;;  %844 = vst [vmem:[%s1391_s27 + $0x98] sm:$0xff] %v602_v15 }
 0x10d   : > { %876 = vst [vmem:[%s1391_s27 + $0x198] sm:$0xff] %v762_v16  ;;  %843 = vst [vmem:[%s1391_s27 + $0x90] sm:$0xff] %v597_v19  ;;  %v1123_v21 = vpop.f32.mrb[20].mxu0 }
 0x10e   : > { %875 = vst [vmem:[%s1391_s27 + $0x190] sm:$0xff] %v757_v20  ;;  %v1171_v22 = vpop.f32.mrb[20].mxu1  ;;  %v612_v23 = vadd.f32 %v1123_v21, %v1384_v3  ;;  %v606_v25 = vpop.f32.mrb[21].mxu0 }
 0x10f   : > { %v772_v24 = vadd.f32 %v1171_v22, %v1384_v3  ;;  %v766_v26 = vpop.f32.mrb[21].mxu1  ;;  %v607_v27 = vadd.f32 %v1384_v3, %v606_v25 }
 0x110   : > { %v767_v28 = vadd.f32 %v1384_v3, %v766_v26  ;;  %846 = vst [vmem:[%s1391_s27 + $0xa8] sm:$0xff] %v612_v23 }
 0x111   : > { %878 = vst [vmem:[%s1391_s27 + $0x1a8] sm:$0xff] %v772_v24  ;;  %845 = vst [vmem:[%s1391_s27 + $0xa0] sm:$0xff] %v607_v27  ;;  %v1126_v29 = vpop.f32.mrb[22].mxu0 }
 0x112   : > { %877 = vst [vmem:[%s1391_s27 + $0x1a0] sm:$0xff] %v767_v28  ;;  %v1174_v30 = vpop.f32.mrb[22].mxu1  ;;  %v622_v31 = vadd.f32 %v1126_v29, %v1384_v3  ;;  %v616_v33 = vpop.f32.mrb[23].mxu0 }
 0x113   : > { %v782_v32 = vadd.f32 %v1174_v30, %v1384_v3  ;;  %v776_v34 = vpop.f32.mrb[23].mxu1  ;;  %v617_v35 = vadd.f32 %v1384_v3, %v616_v33 }
 0x114   : > { %v777_v36 = vadd.f32 %v1384_v3, %v776_v34  ;;  %848 = vst [vmem:[%s1391_s27 + $0xb8] sm:$0xff] %v622_v31 }
 0x115   : > { %880 = vst [vmem:[%s1391_s27 + $0x1b8] sm:$0xff] %v782_v32  ;;  %847 = vst [vmem:[%s1391_s27 + $0xb0] sm:$0xff] %v617_v35  ;;  %v1129_v37 = vpop.f32.mrb[24].mxu0 }
 0x116   : > { %879 = vst [vmem:[%s1391_s27 + $0x1b0] sm:$0xff] %v777_v36  ;;  %v1177_v38 = vpop.f32.mrb[24].mxu1  ;;  %v632_v39 = vadd.f32 %v1129_v37, %v1384_v3  ;;  %v626_v41 = vpop.f32.mrb[25].mxu0 }
 0x117   : > { %v792_v40 = vadd.f32 %v1177_v38, %v1384_v3  ;;  %v786_v42 = vpop.f32.mrb[25].mxu1  ;;  %v627_v43 = vadd.f32 %v1384_v3, %v626_v41 }
 0x118   : > { %v787_v44 = vadd.f32 %v1384_v3, %v786_v42  ;;  %850 = vst [vmem:[%s1391_s27 + $0xc8] sm:$0xff] %v632_v39 }
 0x119   : > { %882 = vst [vmem:[%s1391_s27 + $0x1c8] sm:$0xff] %v792_v40  ;;  %849 = vst [vmem:[%s1391_s27 + $0xc0] sm:$0xff] %v627_v43  ;;  %v1132_v45 = vpop.f32.mrb[26].mxu0 }
 0x11a   : > { %881 = vst [vmem:[%s1391_s27 + $0x1c0] sm:$0xff] %v787_v44  ;;  %v1180_v46 = vpop.f32.mrb[26].mxu1  ;;  %v642_v47 = vadd.f32 %v1132_v45, %v1384_v3  ;;  %v636_v49 = vpop.f32.mrb[27].mxu0 }
 0x11b   : > { %v802_v48 = vadd.f32 %v1180_v46, %v1384_v3  ;;  %v796_v50 = vpop.f32.mrb[27].mxu1  ;;  %v637_v51 = vadd.f32 %v1384_v3, %v636_v49 }
 0x11c   : > { %v797_v52 = vadd.f32 %v1384_v3, %v796_v50  ;;  %852 = vst [vmem:[%s1391_s27 + $0xd8] sm:$0xff] %v642_v47 }
 0x11d   : > { %884 = vst [vmem:[%s1391_s27 + $0x1d8] sm:$0xff] %v802_v48  ;;  %851 = vst [vmem:[%s1391_s27 + $0xd0] sm:$0xff] %v637_v51  ;;  %v1135_v53 = vpop.f32.mrb[28].mxu0 }
 0x11e   : > { %883 = vst [vmem:[%s1391_s27 + $0x1d0] sm:$0xff] %v797_v52  ;;  %v1183_v54 = vpop.f32.mrb[28].mxu1  ;;  %v652_v55 = vadd.f32 %v1135_v53, %v1384_v3  ;;  %v646_v57 = vpop.f32.mrb[29].mxu0 }
 0x11f   : > { %v812_v56 = vadd.f32 %v1183_v54, %v1384_v3  ;;  %v806_v58 = vpop.f32.mrb[29].mxu1  ;;  %v647_v59 = vadd.f32 %v1384_v3, %v646_v57 }
 0x120   : > { %v807_v60 = vadd.f32 %v1384_v3, %v806_v58  ;;  %854 = vst [vmem:[%s1391_s27 + $0xe8] sm:$0xff] %v652_v55 }
 0x121   : > { %886 = vst [vmem:[%s1391_s27 + $0x1e8] sm:$0xff] %v812_v56  ;;  %853 = vst [vmem:[%s1391_s27 + $0xe0] sm:$0xff] %v647_v59  ;;  %v1138_v61 = vpop.f32.mrb[30].mxu0 }
 0x122   : > { %885 = vst [vmem:[%s1391_s27 + $0x1e0] sm:$0xff] %v807_v60  ;;  %v1186_v62 = vpop.f32.mrb[30].mxu1  ;;  %v662_v63 = vadd.f32 %v1138_v61, %v1384_v3  ;;  %v656_v1 = vpop.f32.mrb[31].mxu0 }
 0x123   : > { %v822_v0 = vadd.f32 %v1186_v62, %v1384_v3  ;;  %v816_v2 = vpop.f32.mrb[31].mxu1  ;;  %v657_v4 = vadd.f32 %v1384_v3, %v656_v1 }
 0x124   : > { %v817_v5 = vadd.f32 %v1384_v3, %v816_v2  ;;  %856 = vst [vmem:[%s1391_s27 + $0xf8] sm:$0xff] %v662_v63 }
 0x125   : > { %888 = vst [vmem:[%s1391_s27 + $0x1f8] sm:$0xff] %v822_v0  ;;  %855 = vst [vmem:[%s1391_s27 + $0xf0] sm:$0xff] %v657_v4 }
 0x126   : > { %887 = vst [vmem:[%s1391_s27 + $0x1f0] sm:$0xff] %v817_v5 }
 0x127 PF: > { %s13_s12 = sadd.s32 1, %s1207_s12  }
 0x128   : > { %p10_p4 = scmp.ge.s32.totalorder %s13_s12, 4  }
 0x12a   :  { %12 = sbr.rel (!%p10_p4) target bundleno = 1 (0x1), region = 62 }

</bundles_post_ra>
